<compile_context>
chip_gen: v7x
topology: tpu7x:2x2x1
jax: 0.10.0
libtpu: 0.0.40
codegen_flags: <defaults>
</compile_context>

<pallas_src>
import jax
import jax.numpy as jnp
from jax.experimental import pallas as pl
from jax.experimental.pallas import tpu as pltpu

NEG_SLOPE = 0.1   # nn.LeakyReLU(0.1)
BN_EPS = 1e-5     # nn.BatchNorm2d default eps


def _leaky_relu(x):
    return jnp.where(x > 0, x, NEG_SLOPE * x)


def _make_kernel(L, Wp, P):
    """Per-image residual-block kernel; static dims (L, Wp, P) closed over."""
    # Flattened offsets of the 9 conv taps, ordered (dy, dx) to match w_flat's K axis.
    shifts = [(dy - 1) * Wp + (dx - 1) for dy in range(3) for dx in range(3)]

    def kernel(x_ref, mask_ref, w1_ref, s1_ref, b1_ref,
               w2_ref, s2_ref, b2_ref, out_ref, xw_ref):
        # x_ref:    (1, C, L)  zero-padded, flattened image (spatial dim on lanes)
        # mask_ref: (1, L)     1.0 at interior (non-halo) positions
        # wX_ref:   (C, 9C)    conv weight with the 9 taps folded into K
        # sX/bX:    (C, 1)     folded inference-BatchNorm scale / shift
        # out_ref:  (1, C, L)
        # xw_ref:   (C, L+2P)  VMEM staging slab with a lane halo of P on each side.
        #   The halo columns are intentionally never initialized: they only reach
        #   output columns the wrapper discards, and the conv2 input halo is rebuilt
        #   with an exact-zero select below, so garbage/NaN cannot leak inward.
        interior = mask_ref[...] > 0.0                      # (1, L) bool

        def conv3x3(w_ref):
            # im2col: stack the 9 lane-shifted patches on the sublane axis and issue a
            # single fused K = 9*C MXU matmul (instead of 9 tiny K=C matmuls).
            slab = jnp.concatenate(
                [xw_ref[:, pl.ds(P + s, L)] for s in shifts], axis=0)   # (9C, L)
            return jnp.dot(w_ref[...], slab,
                           preferred_element_type=jnp.float32)          # (C, L)

        x = x_ref[0]                                        # (C, L) residual / input

        # conv1 -> bn1 (folded) -> LeakyReLU; force exact zeros on the halo so conv2
        # sees its implicit zero padding (select, not multiply -> NaN-safe).
        xw_ref[:, pl.ds(P, L)] = x
        h = _leaky_relu(conv3x3(w1_ref) * s1_ref[...] + b1_ref[...])
        h = jnp.where(interior, h, 0.0)

        # conv2 -> bn2 -> + residual -> LeakyReLU.  Halo output columns are garbage
        # but the wrapper slices them away, so no final mask multiply is needed.
        xw_ref[:, pl.ds(P, L)] = h
        h = conv3x3(w2_ref) * s2_ref[...] + b2_ref[...]
        out_ref[0] = _leaky_relu(h + x).astype(out_ref.dtype)

    return kernel


@jax.jit
def residual_block(x_nchw, w1, gamma1, beta1, mean1, var1,
                   w2, gamma2, beta2, mean2, var2):
    """ResidualBlock forward (stride=1, downsample=None); BatchNorm in inference mode.

    x_nchw: (N, C, H, W);  w1, w2: (Cout, Cin, 3, 3) (PyTorch OIHW layout).
    """
    N, C, H, W = x_nchw.shape
    Hp, Wp = H + 2, W + 2
    L = Hp * Wp
    P = 128                       # lane-aligned staging halo; must cover max tap shift
    assert P >= Wp + 1, "P must cover the largest tap offset (Wp + 1)"

    # Fold inference BatchNorm into per-channel scale / shift (tiny plain-JAX glue).
    s1 = gamma1 / jnp.sqrt(var1 + BN_EPS)
    b1 = beta1 - mean1 * s1
    s2 = gamma2 / jnp.sqrt(var2 + BN_EPS)
    b2 = beta2 - mean2 * s2

    # (Cout, Cin, 3, 3) -> (Cout, 9*Cin), tap-major K to match the in-kernel slab.
    w1f = jnp.transpose(w1, (0, 2, 3, 1)).reshape(C, 9 * C)
    w2f = jnp.transpose(w2, (0, 2, 3, 1)).reshape(C, 9 * C)

    # Single spatial zero-pad; the reshape to (N, C, L) is a free contiguous view.
    xflat = jnp.pad(x_nchw, ((0, 0), (0, 0), (1, 1), (1, 1))).reshape(N, C, L)

    # Interior (non-halo) mask over the flattened padded grid, lane-dense (1, L).
    rows = jnp.arange(L) // Wp
    cols = jnp.arange(L) % Wp
    mask = (((rows >= 1) & (rows <= H) & (cols >= 1) & (cols <= W))
            .astype(jnp.float32).reshape(1, L))

    kernel = _make_kernel(L, Wp, P)

    out_flat = pl.pallas_call(
        kernel,
        out_shape=jax.ShapeDtypeStruct((N, C, L), jnp.float32),
        grid_spec=pltpu.PrefetchScalarGridSpec(
            num_scalar_prefetch=0,
            grid=(N,),
            in_specs=[
                pl.BlockSpec((1, C, L), lambda n: (n, 0, 0)),     # x  (per image)
                pl.BlockSpec((1, L), lambda n: (0, 0)),           # interior mask
                pl.BlockSpec((C, 9 * C), lambda n: (0, 0)),       # w1 (C, 9C)
                pl.BlockSpec((C, 1), lambda n: (0, 0)),           # bn1 scale
                pl.BlockSpec((C, 1), lambda n: (0, 0)),           # bn1 shift
                pl.BlockSpec((C, 9 * C), lambda n: (0, 0)),       # w2 (C, 9C)
                pl.BlockSpec((C, 1), lambda n: (0, 0)),           # bn2 scale
                pl.BlockSpec((C, 1), lambda n: (0, 0)),           # bn2 shift
            ],
            out_specs=pl.BlockSpec((1, C, L), lambda n: (n, 0, 0)),
            scratch_shapes=[pltpu.VMEM((C, L + 2 * P), jnp.float32)],
        ),
        # Batch elements are independent -> shard the grid across v7x's 2 TensorCores.
        compiler_params=pltpu.CompilerParams(
            dimension_semantics=("parallel",)),
    )(xflat, mask,
      w1f, s1.reshape(C, 1), b1.reshape(C, 1),
      w2f, s2.reshape(C, 1), b2.reshape(C, 1))

    # Free reshape + one slice to drop the spatial halo.
    return out_flat.reshape(N, C, Hp, Wp)[:, :, 1:H + 1, 1:W + 1]


def _reference(x, w1, g1, be1, m1, v1, w2, g2, be2, m2, v2):
    """Pure-JAX reference of the PyTorch forward (NCHW, inference-mode BN)."""
    def conv(inp, w):
        return jax.lax.conv_general_dilated(
            inp, w, window_strides=(1, 1), padding=((1, 1), (1, 1)),
            dimension_numbers=("NCHW", "OIHW", "NCHW"))

    def bn(inp, g, b, m, v):
        inv = (g / jnp.sqrt(v + BN_EPS))[None, :, None, None]
        return (inp - m[None, :, None, None]) * inv + b[None, :, None, None]

    out = _leaky_relu(bn(conv(x, w1), g1, be1, m1, v1))
    out = bn(conv(out, w2), g2, be2, m2, v2)
    return _leaky_relu(out + x)


if __name__ == "__main__":
    N, C, H, W = 2, 8, 16, 16   # in_channels == out_channels, stride=1, downsample=None
    key = jax.random.PRNGKey(0)
    ks = jax.random.split(key, 9)

    x = jax.random.normal(ks[0], (N, C, H, W), jnp.float32)             # NCHW
    w1 = jax.random.normal(ks[1], (C, C, 3, 3), jnp.float32) * 0.1      # OIHW
    w2 = jax.random.normal(ks[2], (C, C, 3, 3), jnp.float32) * 0.1
    gamma1 = 1.0 + 0.1 * jax.random.normal(ks[3], (C,), jnp.float32)
    beta1 = 0.1 * jax.random.normal(ks[4], (C,), jnp.float32)
    mean1 = 0.1 * jax.random.normal(ks[5], (C,), jnp.float32)
    var1 = jnp.abs(jax.random.normal(ks[6], (C,), jnp.float32)) + 0.5
    gamma2 = 1.0 + 0.1 * jax.random.normal(ks[7], (C,), jnp.float32)
    beta2 = 0.1 * jax.random.normal(ks[8], (C,), jnp.float32)
    mean2 = jnp.zeros((C,), jnp.float32)
    var2 = jnp.ones((C,), jnp.float32)

    out = residual_block(x, w1, gamma1, beta1, mean1, var1,
                         w2, gamma2, beta2, mean2, var2)
    out = jax.block_until_ready(out)

    ref = _reference(x, w1, gamma1, beta1, mean1, var1,
                     w2, gamma2, beta2, mean2, var2)
    assert out.shape == (N, C, H, W)
    err = float(jnp.max(jnp.abs(out - ref)))
    assert jnp.allclose(out, ref, atol=1e-4, rtol=1e-4), err
    print("KERNEL_OK")
</pallas_src>

<mosaic_0001>
module attributes {stable_mosaic.version = 11 : i64} {
  func.func @kernel(%arg0: i32, %arg1: memref<1x8x324xf32, #tpu.memory_space<vmem>>, %arg2: memref<1x324xf32, #tpu.memory_space<vmem>>, %arg3: memref<8x72xf32, #tpu.memory_space<vmem>>, %arg4: memref<8x1xf32, #tpu.memory_space<vmem>>, %arg5: memref<8x1xf32, #tpu.memory_space<vmem>>, %arg6: memref<8x72xf32, #tpu.memory_space<vmem>>, %arg7: memref<8x1xf32, #tpu.memory_space<vmem>>, %arg8: memref<8x1xf32, #tpu.memory_space<vmem>>, %arg9: memref<1x8x324xf32, #tpu.memory_space<vmem>>, %arg10: memref<8x580xf32, #tpu.memory_space<vmem>>) attributes {dimension_semantics = [#tpu.dimension_semantics<parallel>], iteration_bounds = array<i64: 2>, scalar_prefetch = 0 : i64, scratch_operands = 1 : i64, tpu.core_type = #tpu.core_type<tc>, window_params = [{transform_indices = @transform_0, window_bounds = array<i64: 1, 8, 324>}, {pipeline_mode = #tpu.pipeline_mode<synchronous>, transform_indices = @transform_1, window_bounds = array<i64: 1, 324>}, {pipeline_mode = #tpu.pipeline_mode<synchronous>, transform_indices = @transform_2, window_bounds = array<i64: 8, 72>}, {pipeline_mode = #tpu.pipeline_mode<synchronous>, transform_indices = @transform_3, window_bounds = array<i64: 8, 1>}, {pipeline_mode = #tpu.pipeline_mode<synchronous>, transform_indices = @transform_4, window_bounds = array<i64: 8, 1>}, {pipeline_mode = #tpu.pipeline_mode<synchronous>, transform_indices = @transform_5, window_bounds = array<i64: 8, 72>}, {pipeline_mode = #tpu.pipeline_mode<synchronous>, transform_indices = @transform_6, window_bounds = array<i64: 8, 1>}, {pipeline_mode = #tpu.pipeline_mode<synchronous>, transform_indices = @transform_7, window_bounds = array<i64: 8, 1>}, {transform_indices = @transform_8, window_bounds = array<i64: 1, 8, 324>}]} {
    %c0 = arith.constant 0 : index
    %c0_0 = arith.constant 0 : index
    %0 = vector.load %arg2[%c0, %c0_0] : memref<1x324xf32, #tpu.memory_space<vmem>>, vector<1x324xf32>
    %cst = arith.constant 0.000000e+00 : f32
    %1 = vector.broadcast %cst : f32 to vector<1x324xf32>
    %2 = arith.cmpf ogt, %0, %1 : vector<1x324xf32>
    %c0_1 = arith.constant 0 : index
    %c0_2 = arith.constant 0 : index
    %c0_3 = arith.constant 0 : index
    %3 = vector.load %arg1[%c0_1, %c0_2, %c0_3] : memref<1x8x324xf32, #tpu.memory_space<vmem>>, vector<1x8x324xf32>
    %4 = vector.shape_cast %3 : vector<1x8x324xf32> to vector<8x324xf32>
    %c0_4 = arith.constant 0 : index
    %c128 = arith.constant 128 : index
    %5 = vector.load %arg10[%c0_4, %c128] : memref<8x580xf32, #tpu.memory_space<vmem>>, vector<8x324xf32>
    tpu.vector_store %arg10[%c0_4, %c128], %4 {strides = array<i32>} : memref<8x580xf32, #tpu.memory_space<vmem>>, vector<8x324xf32>,
    %c0_5 = arith.constant 0 : index
    %c109 = arith.constant 109 : index
    %6 = vector.load %arg10[%c0_5, %c109] : memref<8x580xf32, #tpu.memory_space<vmem>>, vector<8x324xf32>
    %c0_6 = arith.constant 0 : index
    %c110 = arith.constant 110 : index
    %7 = vector.load %arg10[%c0_6, %c110] : memref<8x580xf32, #tpu.memory_space<vmem>>, vector<8x324xf32>
    %c0_7 = arith.constant 0 : index
    %c111 = arith.constant 111 : index
    %8 = vector.load %arg10[%c0_7, %c111] : memref<8x580xf32, #tpu.memory_space<vmem>>, vector<8x324xf32>
    %c0_8 = arith.constant 0 : index
    %c127 = arith.constant 127 : index
    %9 = vector.load %arg10[%c0_8, %c127] : memref<8x580xf32, #tpu.memory_space<vmem>>, vector<8x324xf32>
    %c0_9 = arith.constant 0 : index
    %c128_10 = arith.constant 128 : index
    %10 = vector.load %arg10[%c0_9, %c128_10] : memref<8x580xf32, #tpu.memory_space<vmem>>, vector<8x324xf32>
    %c0_11 = arith.constant 0 : index
    %c129 = arith.constant 129 : index
    %11 = vector.load %arg10[%c0_11, %c129] : memref<8x580xf32, #tpu.memory_space<vmem>>, vector<8x324xf32>
    %c0_12 = arith.constant 0 : index
    %c145 = arith.constant 145 : index
    %12 = vector.load %arg10[%c0_12, %c145] : memref<8x580xf32, #tpu.memory_space<vmem>>, vector<8x324xf32>
    %c0_13 = arith.constant 0 : index
    %c146 = arith.constant 146 : index
    %13 = vector.load %arg10[%c0_13, %c146] : memref<8x580xf32, #tpu.memory_space<vmem>>, vector<8x324xf32>
    %c0_14 = arith.constant 0 : index
    %c147 = arith.constant 147 : index
    %14 = vector.load %arg10[%c0_14, %c147] : memref<8x580xf32, #tpu.memory_space<vmem>>, vector<8x324xf32>
    %15 = tpu.concatenate %6, %7, %8, %9, %10, %11, %12, %13, %14 in 0 : vector<8x324xf32>, vector<8x324xf32>, vector<8x324xf32>, vector<8x324xf32>, vector<8x324xf32>, vector<8x324xf32>, vector<8x324xf32>, vector<8x324xf32>, vector<8x324xf32> -> vector<72x324xf32>
    %c0_15 = arith.constant 0 : index
    %c0_16 = arith.constant 0 : index
    %16 = vector.load %arg3[%c0_15, %c0_16] : memref<8x72xf32, #tpu.memory_space<vmem>>, vector<8x72xf32>
    %cst_17 = arith.constant dense<0.000000e+00> : vector<8x324xf32>
    %17 = tpu.matmul %16, %15, %cst_17 {dimension_numbers = #tpu.dot_dimension_numbers<[1], [0], [0], [1], [0, 0, 1, 1], [], []>} : vector<8x72xf32>, vector<72x324xf32>, vector<8x324xf32> -> vector<8x324xf32>
    %c0_18 = arith.constant 0 : index
    %c0_19 = arith.constant 0 : index
    %18 = vector.load %arg4[%c0_18, %c0_19] : memref<8x1xf32, #tpu.memory_space<vmem>>, vector<8x1xf32>
    %19 = vector.broadcast %18 : vector<8x1xf32> to vector<8x324xf32>
    %20 = arith.mulf %17, %19 : vector<8x324xf32>
    %c0_20 = arith.constant 0 : index
    %c0_21 = arith.constant 0 : index
    %21 = vector.load %arg5[%c0_20, %c0_21] : memref<8x1xf32, #tpu.memory_space<vmem>>, vector<8x1xf32>
    %22 = vector.broadcast %21 : vector<8x1xf32> to vector<8x324xf32>
    %23 = arith.addf %20, %22 : vector<8x324xf32>
    %cst_22 = arith.constant 0.000000e+00 : f32
    %24 = vector.broadcast %cst_22 : f32 to vector<8x324xf32>
    %25 = arith.cmpf ogt, %23, %24 : vector<8x324xf32>
    %cst_23 = arith.constant 1.000000e-01 : f32
    %26 = vector.broadcast %cst_23 : f32 to vector<8x324xf32>
    %27 = arith.mulf %26, %23 : vector<8x324xf32>
    %28 = arith.select %25, %23, %27 : vector<8x324xi1>, vector<8x324xf32>
    %cst_24 = arith.constant 0.000000e+00 : f32
    %29 = vector.shape_cast %2 : vector<1x324xi1> to vector<1x324xi1>
    %30 = vector.broadcast %29 : vector<1x324xi1> to vector<8x324xi1>
    %31 = vector.broadcast %cst_24 : f32 to vector<8x324xf32>
    %32 = arith.select %30, %28, %31 : vector<8x324xi1>, vector<8x324xf32>
    %c0_25 = arith.constant 0 : index
    %c128_26 = arith.constant 128 : index
    %33 = vector.load %arg10[%c0_25, %c128_26] : memref<8x580xf32, #tpu.memory_space<vmem>>, vector<8x324xf32>
    tpu.vector_store %arg10[%c0_25, %c128_26], %32 {strides = array<i32>} : memref<8x580xf32, #tpu.memory_space<vmem>>, vector<8x324xf32>,
    %c0_27 = arith.constant 0 : index
    %c109_28 = arith.constant 109 : index
    %34 = vector.load %arg10[%c0_27, %c109_28] : memref<8x580xf32, #tpu.memory_space<vmem>>, vector<8x324xf32>
    %c0_29 = arith.constant 0 : index
    %c110_30 = arith.constant 110 : index
    %35 = vector.load %arg10[%c0_29, %c110_30] : memref<8x580xf32, #tpu.memory_space<vmem>>, vector<8x324xf32>
    %c0_31 = arith.constant 0 : index
    %c111_32 = arith.constant 111 : index
    %36 = vector.load %arg10[%c0_31, %c111_32] : memref<8x580xf32, #tpu.memory_space<vmem>>, vector<8x324xf32>
    %c0_33 = arith.constant 0 : index
    %c127_34 = arith.constant 127 : index
    %37 = vector.load %arg10[%c0_33, %c127_34] : memref<8x580xf32, #tpu.memory_space<vmem>>, vector<8x324xf32>
    %c0_35 = arith.constant 0 : index
    %c128_36 = arith.constant 128 : index
    %38 = vector.load %arg10[%c0_35, %c128_36] : memref<8x580xf32, #tpu.memory_space<vmem>>, vector<8x324xf32>
    %c0_37 = arith.constant 0 : index
    %c129_38 = arith.constant 129 : index
    %39 = vector.load %arg10[%c0_37, %c129_38] : memref<8x580xf32, #tpu.memory_space<vmem>>, vector<8x324xf32>
    %c0_39 = arith.constant 0 : index
    %c145_40 = arith.constant 145 : index
    %40 = vector.load %arg10[%c0_39, %c145_40] : memref<8x580xf32, #tpu.memory_space<vmem>>, vector<8x324xf32>
    %c0_41 = arith.constant 0 : index
    %c146_42 = arith.constant 146 : index
    %41 = vector.load %arg10[%c0_41, %c146_42] : memref<8x580xf32, #tpu.memory_space<vmem>>, vector<8x324xf32>
    %c0_43 = arith.constant 0 : index
    %c147_44 = arith.constant 147 : index
    %42 = vector.load %arg10[%c0_43, %c147_44] : memref<8x580xf32, #tpu.memory_space<vmem>>, vector<8x324xf32>
    %43 = tpu.concatenate %34, %35, %36, %37, %38, %39, %40, %41, %42 in 0 : vector<8x324xf32>, vector<8x324xf32>, vector<8x324xf32>, vector<8x324xf32>, vector<8x324xf32>, vector<8x324xf32>, vector<8x324xf32>, vector<8x324xf32>, vector<8x324xf32> -> vector<72x324xf32>
    %c0_45 = arith.constant 0 : index
    %c0_46 = arith.constant 0 : index
    %44 = vector.load %arg6[%c0_45, %c0_46] : memref<8x72xf32, #tpu.memory_space<vmem>>, vector<8x72xf32>
    %cst_47 = arith.constant dense<0.000000e+00> : vector<8x324xf32>
    %45 = tpu.matmul %44, %43, %cst_47 {dimension_numbers = #tpu.dot_dimension_numbers<[1], [0], [0], [1], [0, 0, 1, 1], [], []>} : vector<8x72xf32>, vector<72x324xf32>, vector<8x324xf32> -> vector<8x324xf32>
    %c0_48 = arith.constant 0 : index
    %c0_49 = arith.constant 0 : index
    %46 = vector.load %arg7[%c0_48, %c0_49] : memref<8x1xf32, #tpu.memory_space<vmem>>, vector<8x1xf32>
    %47 = vector.broadcast %46 : vector<8x1xf32> to vector<8x324xf32>
    %48 = arith.mulf %45, %47 : vector<8x324xf32>
    %c0_50 = arith.constant 0 : index
    %c0_51 = arith.constant 0 : index
    %49 = vector.load %arg8[%c0_50, %c0_51] : memref<8x1xf32, #tpu.memory_space<vmem>>, vector<8x1xf32>
    %50 = vector.broadcast %49 : vector<8x1xf32> to vector<8x324xf32>
    %51 = arith.addf %48, %50 : vector<8x324xf32>
    %52 = arith.addf %51, %4 : vector<8x324xf32>
    %cst_52 = arith.constant 0.000000e+00 : f32
    %53 = vector.broadcast %cst_52 : f32 to vector<8x324xf32>
    %54 = arith.cmpf ogt, %52, %53 : vector<8x324xf32>
    %cst_53 = arith.constant 1.000000e-01 : f32
    %55 = vector.broadcast %cst_53 : f32 to vector<8x324xf32>
    %56 = arith.mulf %55, %52 : vector<8x324xf32>
    %57 = arith.select %54, %52, %56 : vector<8x324xi1>, vector<8x324xf32>
    %c0_54 = arith.constant 0 : index
    %c0_55 = arith.constant 0 : index
    %c0_56 = arith.constant 0 : index
    %58 = vector.load %arg9[%c0_54, %c0_55, %c0_56] : memref<1x8x324xf32, #tpu.memory_space<vmem>>, vector<1x8x324xf32>
    %59 = vector.shape_cast %58 : vector<1x8x324xf32> to vector<8x324xf32>
    %60 = vector.shape_cast %57 : vector<8x324xf32> to vector<1x8x324xf32>
    tpu.vector_store %arg9[%c0_54, %c0_55, %c0_56], %60 {strides = array<i32>} : memref<1x8x324xf32, #tpu.memory_space<vmem>>, vector<1x8x324xf32>,
    return
  }
  func.func @transform_0(%arg0: i32) -> (i32, i32, i32) {
    %c0_i32 = arith.constant 0 : i32
    %c0_i32_0 = arith.constant 0 : i32
    %c0_i32_1 = arith.constant 0 : i32
    return %arg0, %c0_i32, %c0_i32_0 : i32, i32, i32
  }
  func.func @transform_1(%arg0: i32) -> (i32, i32) {
    %c0_i32 = arith.constant 0 : i32
    %c0_i32_0 = arith.constant 0 : i32
    %c0_i32_1 = arith.constant 0 : i32
    return %c0_i32, %c0_i32_0 : i32, i32
  }
  func.func @transform_2(%arg0: i32) -> (i32, i32) {
    %c0_i32 = arith.constant 0 : i32
    %c0_i32_0 = arith.constant 0 : i32
    %c0_i32_1 = arith.constant 0 : i32
    return %c0_i32, %c0_i32_0 : i32, i32
  }
  func.func @transform_3(%arg0: i32) -> (i32, i32) {
    %c0_i32 = arith.constant 0 : i32
    %c0_i32_0 = arith.constant 0 : i32
    %c0_i32_1 = arith.constant 0 : i32
    return %c0_i32, %c0_i32_0 : i32, i32
  }
  func.func @transform_4(%arg0: i32) -> (i32, i32) {
    %c0_i32 = arith.constant 0 : i32
    %c0_i32_0 = arith.constant 0 : i32
    %c0_i32_1 = arith.constant 0 : i32
    return %c0_i32, %c0_i32_0 : i32, i32
  }
  func.func @transform_5(%arg0: i32) -> (i32, i32) {
    %c0_i32 = arith.constant 0 : i32
    %c0_i32_0 = arith.constant 0 : i32
    %c0_i32_1 = arith.constant 0 : i32
    return %c0_i32, %c0_i32_0 : i32, i32
  }
  func.func @transform_6(%arg0: i32) -> (i32, i32) {
    %c0_i32 = arith.constant 0 : i32
    %c0_i32_0 = arith.constant 0 : i32
    %c0_i32_1 = arith.constant 0 : i32
    return %c0_i32, %c0_i32_0 : i32, i32
  }
  func.func @transform_7(%arg0: i32) -> (i32, i32) {
    %c0_i32 = arith.constant 0 : i32
    %c0_i32_0 = arith.constant 0 : i32
    %c0_i32_1 = arith.constant 0 : i32
    return %c0_i32, %c0_i32_0 : i32, i32
  }
  func.func @transform_8(%arg0: i32) -> (i32, i32, i32) {
    %c0_i32 = arith.constant 0 : i32
    %c0_i32_0 = arith.constant 0 : i32
    %c0_i32_1 = arith.constant 0 : i32
    return %arg0, %c0_i32, %c0_i32_0 : i32, i32, i32
  }
}

</mosaic_0001>

<bundles_post_ra>
// kernel: residual_block.1
= control target key start
LH: loop header
LB: loop body
LE: loop exit
PB: predicated region body
PF: predicated region fallthrough
CT: control target
= control target key end

     0   :  { %s1649_s27 = smov 0   ;;  %s1987_s0 = inlined_call_operand.vmem [shape: f32[2,8,324], index: 0, kind: input, shape index: {}]   ;;  %s1988_s1 = inlined_call_operand.vmem [shape: f32[1,324], index: 1, kind: input, shape index: {}]   ;;  %s1989_s2 = inlined_call_operand.vmem [shape: f32[8,72], index: 2, kind: input, shape index: {}]   ;;  %s1990_s3 = inlined_call_operand.vmem [shape: f32[8,1], index: 3, kind: input, shape index: {}]   ;;  %s1991_s4 = inlined_call_operand.vmem [shape: f32[8,1], index: 4, kind: input, shape index: {}]   ;;  %s1992_s5 = inlined_call_operand.vmem [shape: f32[8,72], index: 5, kind: input, shape index: {}]   ;;  %s1993_s6 = inlined_call_operand.vmem [shape: f32[8,1], index: 6, kind: input, shape index: {}]   ;;  %s1994_s7 = inlined_call_operand.vmem [shape: f32[8,1], index: 7, kind: input, shape index: {}]   ;;  %s1995_s8 = inlined_call_operand.vmem [shape: f32[2,8,324], index: 8, kind: output, shape index: {}]  }
   0x1 LB: > { %s1166_s28 = sadd.s32 4294967295, %s1589_s27   ;;  %p1170_p0 = scmp.ge.s32.totalorder %s1589_s27, 1  ;;  %s1589_s27 = sphi %s1649_s27, %s18_s27  }
   0x2   : > { %p262_p1 = scmp.lt.s32.totalorder %s1589_s27, 3 }
   0x4   : > { %p263_p2 = pnand %p1170_p0, %p262_p1 }
   0x5   : > { %p296_p3 = scmp.lt.s32.totalorder (!%p263_p2), %s1166_s28, 1  ;;  %vm313_vm0 = vcmask (!%p263_p2), 556032   ;;  %s1591_s11 = smov (!%p263_p2), 126   ;;  %v1676_v4 = vld [vmem:[#allocation2] sm:$0xff] (!%p263_p2)  ;;  %v1600_v28 = vmov (!%p263_p2), 0.0|0.0   ;;  %vm331_vm1 = vcmask (!%p263_p2), 1039360  }
   0x6   : > { %266 = sbr.rel (%p263_p2) target bundleno = 1052 (0x41c), region = 52  ;;  %s1592_s12 = smov (!%p263_p2), 127   ;;  %1257 = vmatprep.subr.bf16.mxu1 (!%p263_p2), %v1600_v28  ;;  %vm355_vm2 = vcmask (!%p263_p2), 900096   ;;  %vm343_vm3 = vcmask (!%p263_p2), 1031168   ;;  %vm374_vm4 = vcmask (!%p263_p2), 883712   ;;  %vm392_vm5 = vcmask (!%p263_p2), 744448  }
   0x7   : > { %s1593_s13 = smov (!%p263_p2), 110   ;;  %s1594_s14 = smov (!%p263_p2), 109   ;;  %vm365_vm6 = vcmask (!%p263_p2), 891904   ;;  %vm401_vm7 = vcmask (!%p263_p2), 736256   ;;  %vm383_vm8 = vcmask (!%p263_p2), 752640   ;;  %vm1602_vm9 = vmmov (!%p263_p2), 0  }
   0x8   : > { %s1595_s15 = smov (!%p263_p2), 108   ;;  %s1596_s16 = smov (!%p263_p2), 92   ;;  %vm477_vm10 = vcmask (!%p263_p2), 154624   ;;  %vm1996_vm11 = vcmask (!%p263_p2), 588800  }
   0x9   : > { %s1597_s17 = smov (!%p263_p2), 91   ;;  %s1598_s18 = smov (!%p263_p2), 90  }
   0xa   : > { %s1599_s19 = smov (!%p263_p2), 19  }
   0xd   : > { %s2000_s28 = smov (!%p296_p3, %s1166_s28), 1 }
   0xe   : > { %s1297_s29 = smul.u32 24, %s2000_s28 }
  0x10   : > { %s1665_s10 = scalar_lea.vmem %s1987_s0, %s1297_s29 }
  0x11   : > { %v308_v0 = vld [vmem:[%s1665_s10] sm:$0xff]  ;;  %v309_v1 = vld [vmem:[%s1665_s10 + $0x8] sm:$0xff]  ;;  %v1670_v2 = vld [vmem:[%s1665_s10 + $0x10] sm:$0xff] }
  0x12   : > { %v1329_v3 = vpack.i.bf16 %v309_v1, %v308_v0  ;;  %314 = vst.msk [vmem:[#allocation2 + $0x18] sm:$0xff] %vm313_vm0, %v1670_v2 }
  0x14   : > { %1330 = vrot.lane.b32.xlu1 %v1329_v3, %s1591_s11  ;;  %1320 = vrot.lane.b32.xlu0 %v1329_v3, %s1592_s12 }
  0x19   : > { %v318_v5 = vld [vmem:[#allocation2 + $0x18] sm:$0xff] }
  0x1a   : > { %v1334_v6 = vpack.i.bf16 %v1676_v4, %v318_v5 }
  0x1c   : > { %1335 = vrot.lane.b32.xlu1 %v1334_v6, %s1591_s11  ;;  %1325 = vrot.lane.b32.xlu0 %v1334_v6, %s1592_s12 }
  0x20   : > { %1345 = vrot.lane.b32.xlu1 %v1334_v6, %s1593_s13  ;;  %1340 = vrot.lane.b32.xlu0 %v1329_v3, %s1593_s13 }
  0x24   : > { %363 = vrot.lane.b32.xlu1 %v318_v5, %s1594_s14  ;;  %1350 = vrot.lane.b32.xlu0 %v1329_v3, %s1594_s14 }
  0x28   : > { %372 = vrot.lane.b32.xlu1 %v318_v5, %s1595_s15  ;;  %1355 = vrot.lane.b32.xlu0 %v1329_v3, %s1595_s15 }
  0x2c   : > { %381 = vrot.lane.b32.xlu1 %v318_v5, %s1596_s16  ;;  %1360 = vrot.lane.b32.xlu0 %v1329_v3, %s1596_s16 }
  0x30   : > { %390 = vrot.lane.b32.xlu1 %v318_v5, %s1597_s17  ;;  %1365 = vrot.lane.b32.xlu0 %v1329_v3, %s1597_s17 }
  0x34   : > { %395 = vrot.lane.b32.xlu0 %v308_v0, %s1598_s18  ;;  %397 = vrot.lane.b32.xlu1 %v309_v1, %s1598_s18 }
  0x38   : > { %399 = vrot.lane.b32.xlu0 %v318_v5, %s1598_s18  ;;  %1370 = vrot.lane.b32.xlu1 %v1329_v3, %s1599_s19 }
  0x86   : > { %v1695_v7 = vpop.permute.xlu1 %1330  ;;  %v1321_v8 = vpop.permute.xlu0 %1320 }
  0x87   : > { %v1323_v29 = vunpack.i.h.bf16 %v1321_v8  ;;  %v1322_v30 = vunpack.i.l.bf16 %v1321_v8  ;;  %v1333_v41 = vunpack.i.h.bf16 %v1695_v7  ;;  %v1332_v42 = vunpack.i.l.bf16 %v1695_v7 }
  0x89   : > { %v333_v43 = vsel %vm331_vm1, %v1322_v30, %v1323_v29  ;;  %v345_v51 = vsel %vm343_vm3, %v1332_v42, %v1333_v41 }
  0x8e   : > { %v1697_v9 = vpop.permute.xlu1 %1335  ;;  %v1326_v10 = vpop.permute.xlu0 %1325 }
  0x8f   : > { %v1327_v11 = vunpack.i.l.bf16 %v1326_v10  ;;  %v1337_v15 = vunpack.i.l.bf16 %v1697_v9  ;;  %v1328_v31 = vunpack.i.h.bf16 %v1326_v10  ;;  %v1338_v54 = vunpack.i.h.bf16 %v1697_v9 }
  0x91   : > { %v1374_v12 = vpack.i.bf16 %v1327_v11, %v318_v5  ;;  %v334_v39 = vsel %vm331_vm1, %v1323_v29, %v1327_v11  ;;  %v332_v44 = vsel %vm331_vm1, %v1328_v31, %v1322_v30  ;;  %v346_v52 = vsel %vm343_vm3, %v1333_v41, %v1337_v15 }
  0x92   : > { %v1699_v13 = vpop.permute.xlu1 %1345  ;;  %v1701_v14 = vpop.permute.xlu0 %1340  ;;  %v1404_v45 = vpack.i.bf16 %v334_v39, %v333_v43  ;;  %v1409_v49 = vpack.i.bf16 %v332_v44, %v1676_v4  ;;  %v1414_v58 = vpack.i.bf16 %v346_v52, %v345_v51  ;;  %v344_v63 = vsel %vm343_vm3, %v1338_v54, %v1332_v42 }
  0x93   : > { %v1347_v16 = vunpack.i.l.bf16 %v1699_v13  ;;  %1375 = vrot.lane.b32.xlu0 %v1374_v12, %s1599_s19  ;;  %v1343_v37 = vunpack.i.h.bf16 %v1701_v14  ;;  %v1342_v38 = vunpack.i.l.bf16 %v1701_v14  ;;  %v1348_v50 = vunpack.i.h.bf16 %v1699_v13 }
  0x95   : > { %v1379_v17 = vpack.i.bf16 %v1347_v16, %v1337_v15  ;;  %v357_v47 = vsel %vm355_vm2, %v1342_v38, %v1343_v37  ;;  %v358_v48 = vsel %vm355_vm2, %v1343_v37, %v1347_v16  ;;  %v356_v61 = vsel %vm355_vm2, %v1348_v50, %v1342_v38 }
  0x96   : > { %v1706_v18 = vpop.permute.xlu1 %363  ;;  %v1708_v19 = vpop.permute.xlu0 %1350  ;;  %v1419_v53 = vpack.i.bf16 %v358_v48, %v357_v47  ;;  %v1424_v3 = vpack.i.bf16 %v356_v61, %v344_v63  ;;  %v1601_v15 = vmov 0.0  }
  0x97   : > { %1380 = vrot.lane.b32.xlu0 %v1379_v17, %s1599_s19  ;;  %v1352_v22 = vunpack.i.l.bf16 %v1708_v19  ;;  %v1353_v60 = vunpack.i.h.bf16 %v1708_v19  ;;  %600 = vmatprep.mubr.f32.mxu0 %v1601_v15  ;;  %v1603_v17 = vmov 0   ;;  %v686_v19 = vld [vmem:[%s1991_s4] sm:$0xff] }
  0x98   : > { %1217 = vmatprep.mubr.msk.f32.mxu1 %vm1602_vm9, %v1601_v15  ;;  %1449 = vset.pattern.permute.xlu1 %v1603_v17 }
  0x99   : > { %v366_v6 = vsel %vm365_vm6, %v1352_v22, %v1353_v60  ;;  %v367_v7 = vsel %vm365_vm6, %v1353_v60, %v1706_v18  ;;  %1450 = vset.pattern.permute.xlu0 %v1603_v17 }
  0x9a   : > { %v373_v20 = vpop.permute.xlu1 %372  ;;  %v1356_v21 = vpop.permute.xlu0 %1355  ;;  %v1429_v11 = vpack.i.bf16 %v367_v7, %v366_v6 }
  0x9b   : > { %v1389_v23 = vpack.i.bf16 %v373_v20, %v1706_v18  ;;  %v1357_v24 = vunpack.i.l.bf16 %v1356_v21  ;;  %v1358_v46 = vunpack.i.h.bf16 %v1356_v21 }
  0x9d   : > { %v1384_v25 = vpack.i.bf16 %v1357_v24, %v1352_v22  ;;  %1390 = vrot.lane.b32.xlu0 %v1389_v23, %s1599_s19  ;;  %v375_v56 = vsel %vm374_vm4, %v1357_v24, %v1358_v46  ;;  %v376_v57 = vsel %vm374_vm4, %v1358_v46, %v373_v20  ;;  %v677_v20 = vld [vmem:[%s1990_s3] sm:$0xff] }
  0x9e   : > { %v1716_v26 = vpop.permute.xlu1 %381  ;;  %v1718_v27 = vpop.permute.xlu0 %1360  ;;  %v1434_v62 = vpack.i.bf16 %v376_v57, %v375_v56 }
  0x9f   : > { %1385 = vrot.lane.b32.xlu1 %v1384_v25, %s1599_s19  ;;  %v1362_v34 = vunpack.i.l.bf16 %v1718_v27  ;;  %v1363_v5 = vunpack.i.h.bf16 %v1718_v27 }
  0xa1   : > { %v384_v13 = vsel %vm383_vm8, %v1362_v34, %v1363_v5  ;;  %v385_v14 = vsel %vm383_vm8, %v1363_v5, %v1716_v26 }
  0xa2   : > { %v391_v32 = vpop.permute.xlu1 %390  ;;  %v1366_v33 = vpop.permute.xlu0 %1365  ;;  %v1439_v16 = vpack.i.bf16 %v385_v14, %v384_v13 }
  0xa3   : > { %v1399_v35 = vpack.i.bf16 %v391_v32, %v1716_v26  ;;  %v1367_v36 = vunpack.i.l.bf16 %v1366_v33  ;;  %v1368_v55 = vunpack.i.h.bf16 %v1366_v33 }
  0xa5   : > { %v1394_v40 = vpack.i.bf16 %v1367_v36, %v1362_v34  ;;  %1400 = vrot.lane.b32.xlu0 %v1399_v35, %s1599_s19  ;;  %v393_v0 = vsel %vm392_vm5, %v1367_v36, %v1368_v55  ;;  %v394_v1 = vsel %vm392_vm5, %v1368_v55, %v391_v32 }
  0xa6   : > { %v396_v59 = vpop.permute.xlu0 %395  ;;  %v1444_v8 = vpack.i.bf16 %v394_v1, %v393_v0  ;;  %v398_v9 = vpop.permute.xlu1 %397 }
  0xa7   : > { %1395 = vrot.lane.b32.xlu1 %v1394_v40, %s1599_s19  ;;  %v402_v18 = vsel %vm401_vm7, %v396_v59, %v398_v9 }
  0xa9   : > { %1405 = vrot.lane.b32.xlu0 %v1404_v45, %s1599_s19 }
  0xaa   : > { %v400_v10 = vpop.permute.xlu0 %399  ;;  %v1371_v23 = vpop.permute.xlu1 %1370 }
  0xab   : > { %1410 = vrot.lane.b32.xlu1 %v1409_v49, %s1599_s19  ;;  %v403_v12 = vsel %vm401_vm7, %v398_v9, %v400_v10  ;;  %v1373_v27 = vunpack.i.h.bf16 %v1371_v23  ;;  %v1372_v29 = vunpack.i.l.bf16 %v1371_v23 }
  0xad   : > { %1420 = vrot.lane.b32.xlu0 %v1419_v53, %s1599_s19  ;;  %v479_v37 = vsel %vm477_vm10, %v1372_v29, %v1373_v27 }
  0xaf   : > { %1415 = vrot.lane.b32.xlu1 %v1414_v58, %s1599_s19 }
  0xb1   : > { %1435 = vrot.lane.b32.xlu0 %v1434_v62, %s1599_s19 }
  0xb3   : > { %1425 = vrot.lane.b32.xlu1 %v1424_v3, %s1599_s19 }
  0xb5   : > { %1445 = vrot.lane.b32.xlu0 %v1444_v8, %s1599_s19 }
  0xb7   : > { %1430 = vrot.lane.b32.xlu1 %v1429_v11, %s1599_s19 }
  0xb9   : > { %473 = vrot.lane.b32.xlu0 %v403_v12, %s1599_s19 }
  0xbb   : > { %1440 = vrot.lane.b32.xlu1 %v1439_v16, %s1599_s19 }
  0xbd   : > { %475 = vrot.lane.b32.xlu0 %v400_v10, %s1599_s19 }
  0xbf   : > { %471 = vrot.lane.b32.xlu1 %v402_v18, %s1599_s19 }
  0xc1   : > { %689 = vperm.xlu0 %1450, %v686_v19  }
  0xc3   : > { %469 = vrot.lane.b32.xlu1 %v396_v59, %s1599_s19 }
  0xc7   : > { %680 = vperm.xlu1 %1449, %v677_v20  }
 0x105   : > { %v1376_v21 = vpop.permute.xlu0 %1375 }
 0x106   : > { %v1377_v30 = vunpack.i.l.bf16 %v1376_v21  ;;  %v1378_v33 = vunpack.i.h.bf16 %v1376_v21 }
 0x108   : > { %v480_v38 = vsel %vm477_vm10, %v1373_v27, %v1377_v30 }
 0x109   : > { %v1381_v22 = vpop.permute.xlu0 %1380 }
 0x10a   : > { %v1383_v52 = vunpack.i.h.bf16 %v1381_v22  ;;  %v1382_v53 = vunpack.i.l.bf16 %v1381_v22 }
 0x10f   : > { %v1782_v24 = vpop.permute.xlu0 %1390 }
 0x110   : > { %v1393_v10 = vunpack.i.h.bf16 %v1782_v24  ;;  %v1392_v11 = vunpack.i.l.bf16 %v1782_v24 }
 0x111   : > { %v1784_v25 = vpop.permute.xlu1 %1385 }
 0x112   : > { %v1388_v9 = vunpack.i.h.bf16 %v1784_v25  ;;  %v1387_v14 = vunpack.i.l.bf16 %v1784_v25 }
 0x117   : > { %v1786_v26 = vpop.permute.xlu0 %1400 }
 0x118   : > { %v1403_v16 = vunpack.i.h.bf16 %v1786_v26 }
 0x119   : > { %v1788_v31 = vpop.permute.xlu1 %1395 }
 0x11a   : > { %v1398_v25 = vunpack.i.h.bf16 %v1788_v31 }
 0x11b   : > { %v1406_v32 = vpop.permute.xlu0 %1405 }
 0x11c   : > { %v1408_v34 = vunpack.i.h.bf16 %v1406_v32  ;;  %v1407_v35 = vunpack.i.l.bf16 %v1406_v32 }
 0x11d   : > { %v1411_v36 = vpop.permute.xlu1 %1410 }
 0x11e   : > { %v1413_v39 = vunpack.i.h.bf16 %v1411_v36  ;;  %v1412_v40 = vunpack.i.l.bf16 %v1411_v36  ;;  %v482_v41 = vsel %vm477_vm10, %v1407_v35, %v1408_v34  ;;  %v483_v42 = vsel %vm477_vm10, %v1408_v34, %v1378_v33 }
 0x11f   : > { %v1421_v43 = vpop.permute.xlu0 %1420  ;;  %v1241_v44 = vpack.c.bf16 %v482_v41, %v479_v37  ;;  %v1258_v45 = vpack.c.bf16 %v483_v42, %v480_v38  ;;  %v1402_v37 = vunpack.i.l.bf16 %v1786_v26  ;;  %v1397_v38 = vunpack.i.l.bf16 %v1788_v31 }
 0x120   : > { %v1423_v46 = vunpack.i.h.bf16 %v1421_v43  ;;  %v1422_v47 = vunpack.i.l.bf16 %v1421_v43  ;;  %v478_v48 = vsel %vm477_vm10, %v1412_v40, %v1372_v29  ;;  %v481_v49 = vsel %vm477_vm10, %v1413_v39, %v1407_v35 }
 0x121   : > { %1242 = vmatprep.subr.bf16.mxu0 %v1241_v44  ;;  %1259 = vmatpush3.bf16.msra.mxu1 %v1258_v45  ;;  %v1416_v50 = vpop.permute.xlu1 %1415  ;;  %v1243_v51 = vpack.c.bf16 %v481_v49, %v478_v48 }
 0x122   : > { %v1418_v54 = vunpack.i.h.bf16 %v1416_v50  ;;  %v1417_v55 = vunpack.i.l.bf16 %v1416_v50  ;;  %1260 = vmatprep.subr.bf16.mxu1 %v1600_v28  ;;  %v488_v58 = vsel %vm477_vm10, %v1422_v47, %v1423_v46  ;;  %v489_v60 = vsel %vm477_vm10, %v1423_v46, %v1383_v52  ;;  %v404_v52 = vld [vmem:[%s1989_s2] sm:$0xff] }
 0x123   : > { %v1436_v56 = vpop.permute.xlu0 %1435  ;;  %1244 = vmatpush1.bf16.msra.mxu0 %v1243_v51 }
 0x124   : > { %v485_v57 = vsel %vm477_vm10, %v1417_v55, %v1418_v54  ;;  %v486_v59 = vsel %vm477_vm10, %v1418_v54, %v1382_v53  ;;  %v1438_v3 = vunpack.i.h.bf16 %v1436_v56  ;;  %v1437_v5 = vunpack.i.l.bf16 %v1436_v56  ;;  %v306_v56 = vld [vmem:[%s1988_s1] sm:$0x7] }
 0x125   : > { %v1426_v61 = vpop.permute.xlu1 %1425  ;;  %v1245_v62 = vpack.c.bf16 %v488_v58, %v485_v57  ;;  %v1261_v63 = vpack.c.bf16 %v489_v60, %v486_v59  ;;  %vm307_vm12 = vcmp.gt.f32.partialorder %v306_v56, 0.0 }
 0x126   : > { %v1428_v0 = vunpack.i.h.bf16 %v1426_v61  ;;  %v1427_v1 = vunpack.i.l.bf16 %v1426_v61  ;;  %v494_v22 = vsel %vm477_vm10, %v1437_v5, %v1438_v3  ;;  %v495_v23 = vsel %vm477_vm10, %v1438_v3, %v1393_v10 }
 0x127   : > { %v1446_v6 = vpop.permute.xlu0 %1445  ;;  %1246 = vmatprep.subr.bf16.mxu0 %v1245_v62  ;;  %1262 = vmatpush3.bf16.msra.mxu1 %v1261_v63  ;;  %v493_v30 = vsel %vm477_vm10, %v1388_v9, %v1437_v5  ;;  %v704_v60 = vsel %vm307_vm12, 1, %v1603_v17 }
 0x128   : > { %v484_v7 = vsel %vm477_vm10, %v1427_v1, %v1417_v55  ;;  %v487_v8 = vsel %vm477_vm10, %v1428_v0, %v1422_v47  ;;  %1263 = vmatprep.subr.bf16.mxu1 %v1600_v28  ;;  %v1448_v20 = vunpack.i.h.bf16 %v1446_v6  ;;  %v1447_v21 = vunpack.i.l.bf16 %v1446_v6 }
 0x129   : > { %v1431_v12 = vpop.permute.xlu1 %1430  ;;  %v1247_v13 = vpack.c.bf16 %v487_v8, %v484_v7  ;;  %v705_v55 = vlaneseq }
 0x12a   : > { %v1433_v18 = vunpack.i.h.bf16 %v1431_v12  ;;  %v1432_v19 = vunpack.i.l.bf16 %v1431_v12  ;;  %v500_v41 = vsel %vm477_vm10, %v1447_v21, %v1448_v20  ;;  %v501_v42 = vsel %vm477_vm10, %v1448_v20, %v1403_v16 }
 0x12b   : > { %1248 = vmatpush1.bf16.msra.mxu0 %v1247_v13  ;;  %v474_v32 = vpop.permute.xlu0 %473  ;;  %v499_v43 = vsel %vm477_vm10, %v1398_v25, %v1447_v21  ;;  %v706_v57 = vshrl.u32 %v705_v55, 7 }
 0x12c   : > { %v491_v27 = vsel %vm477_vm10, %v1432_v19, %v1433_v18  ;;  %v492_v29 = vsel %vm477_vm10, %v1433_v18, %v1392_v11  ;;  %v490_v24 = vsel %vm477_vm10, %v1387_v14, %v1432_v19 }
 0x12d   : > { %v1441_v33 = vpop.permute.xlu1 %1440  ;;  %v1249_v34 = vpack.c.bf16 %v494_v22, %v491_v27  ;;  %v1264_v35 = vpack.c.bf16 %v495_v23, %v492_v29  ;;  %v1251_v36 = vpack.c.bf16 %v493_v30, %v490_v24  ;;  %v715_v58 = vsub.s32 2, %v706_v57 }
 0x12e   : > { %v1443_v39 = vunpack.i.h.bf16 %v1441_v33  ;;  %v1442_v40 = vunpack.i.l.bf16 %v1441_v33  ;;  %v707_v59 = vsub.s32 0, %v706_v57  ;;  %v711_v62 = vsub.s32 1, %v706_v57 }
 0x12f   : > { %1250 = vmatprep.subr.bf16.mxu0 %v1249_v34  ;;  %1265 = vmatpush3.bf16.msra.mxu1 %v1264_v35  ;;  %v476_v49 = vpop.permute.xlu0 %475  ;;  %v716_v1 = vrot.slane %v704_v60, %v715_v58 }
 0x130   : > { %1252 = vmatpush1.bf16.msra.mxu0 %v1251_v36  ;;  %1266 = vmatprep.subr.bf16.mxu1 %v1600_v28  ;;  %v497_v44 = vsel %vm477_vm10, %v1442_v40, %v1443_v39  ;;  %v498_v45 = vsel %vm477_vm10, %v1443_v39, %v1402_v37  ;;  %v496_v26 = vsel %vm477_vm10, %v1397_v38, %v1442_v40 }
 0x131   : > { %v472_v31 = vpop.permute.xlu1 %471  ;;  %v1253_v46 = vpack.c.bf16 %v500_v41, %v497_v44  ;;  %v1267_v47 = vpack.c.bf16 %v501_v42, %v498_v45  ;;  %v1255_v48 = vpack.c.bf16 %v499_v43, %v496_v26  ;;  %v504_v53 = vsel %vm477_vm10, %v474_v32, %v476_v49 }
 0x132   : > { %v503_v50 = vsel %vm477_vm10, %v472_v31, %v474_v32  ;;  %v708_v7 = vrot.slane %v704_v60, %v707_v59  ;;  %v712_v10 = vrot.slane %v704_v60, %v711_v62  ;;  %vm719_vm13 = vcmp.eq.s32.totalorder %v716_v1, 1 }
 0x133   : > { %1254 = vmatprep.subr.bf16.mxu0 %v1253_v46  ;;  %1268 = vmatpush3.bf16.msra.mxu1 %v1267_v47 }
 0x134   : > { %1256 = vmatpush1.bf16.msra.mxu0 %v1255_v48  ;;  %1215 = vmatprep.subr.mxu1 %v1601_v15  ;;  %vm717_vm15 = vcmp.eq.s32.totalorder %v708_v7, 1  ;;  %vm718_vm12 = vcmp.eq.s32.totalorder %v712_v10, 1 }
 0x135   : > { %v470_v51 = vpop.permute.xlu1 %469  ;;  %552 = vmatprep.subr.mxu0 %v503_v50 }
 0x136   : > { %v502_v54 = vsel %vm477_vm10, %v470_v51, %v472_v31 }
 0x137   : > { %1216 = vmatpush3.msra.mxu1 %v504_v53 }
 0x138   : > { %553 = vmatpush1.msra.mxu0 %v502_v54  ;;  %1218 = vmatmul.mubr.msk.f32.vlgmr.msra.gmra.mrb[0].mxu1 %vm1996_vm11, %v404_v52 }
 0x139   : > { %1173 = vmatmul.mubr.msk.f32.vlgmr.msra.gmra.mrb[0].mxu0 %vm1996_vm11, %v404_v52  ;;  %1285 = vmatprep.subr.bf16.mxu1 %v1600_v28 }
 0x13a   : > { %1238 = vmatprep.mubr.msk.f32.mxu1 %vm1602_vm9, %v1601_v15  ;;  %1001 = vmatprep.mubr.f32.mxu0 %v1601_v15 }
 0x140   : > { %v690_v0 = vpop.permute.xlu0 %689 }
 0x146   : > { %v681_v61 = vpop.permute.xlu1 %680 }
 0x20b   : > { %v673_v63 = vpop.f32.mrb[0].mxu1 }
 0x20c   : > { %v685_v3 = vmul.f32 %v681_v61, %v673_v63  ;;  %v602_v5 = vpop.f32.mrb[0].mxu0  ;;  %v1219_v6 = vpop.f32.mrb[1].mxu1 }
 0x20d   : > { %v683_v8 = vmul.f32 %v681_v61, %v602_v5  ;;  %v604_v9 = vpop.f32.mrb[1].mxu0 }
 0x20e   : > { %v694_v11 = vadd.f32 %v690_v0, %v685_v3  ;;  %v684_v12 = vmul.f32 %v681_v61, %v604_v9 }
 0x20f   : > { %v692_v13 = vadd.f32 %v690_v0, %v683_v8 }
 0x210   : > { %vm697_vm14 = vcmp.gt.f32.partialorder %v694_v11, 0.0  ;;  %v700_v14 = vmul.f32 0.1, %v694_v11  ;;  %v693_v16 = vadd.f32 %v690_v0, %v684_v12 }
 0x211   : > { %vm695_vm9 = vcmp.gt.f32.partialorder %v692_v13, 0.0  ;;  %v698_v17 = vmul.f32 0.1, %v692_v13 }
 0x212   : > { %v703_v18 = vsel %vm697_vm14, %v694_v11, %v700_v14  ;;  %vm696_vm11 = vcmp.gt.f32.partialorder %v693_v16, 0.0  ;;  %v699_v19 = vmul.f32 0.1, %v693_v16 }
 0x213   : > { %v701_v20 = vsel %vm695_vm9, %v692_v13, %v698_v17  ;;  %v722_v21 = vsel %vm719_vm13, %v703_v18, 0.0 }
 0x214   : > { %v720_v22 = vsel %vm717_vm15, %v701_v20, 0.0  ;;  %725 = vst.msk [vmem:[#allocation2 + $0x18] sm:$0xff] %vm313_vm0, %v722_v21  ;;  %v702_v23 = vsel %vm696_vm11, %v693_v16, %v699_v19 }
 0x215   : > { %v721_v27 = vsel %vm718_vm12, %v702_v23, 0.0 }
 0x216   : > { %v1471_v29 = vpack.i.bf16 %v721_v27, %v720_v22 }
 0x218   : > { %1472 = vrot.lane.b32.xlu0 %v1471_v29, %s1591_s11 }
 0x21b   : > { %v729_v24 = vld [vmem:[#allocation2 + $0x18] sm:$0xff] }
 0x21c   : > { %v1451_v30 = vpack.i.bf16 %v1676_v4, %v729_v24  ;;  %1477 = vrot.lane.b32.xlu0 %v1471_v29, %s1593_s13 }
 0x21e   : > { %1452 = vrot.lane.b32.xlu1 %v1451_v30, %s1592_s12 }
 0x220   : > { %1482 = vrot.lane.b32.xlu0 %v1471_v29, %s1594_s14 }
 0x222   : > { %1457 = vrot.lane.b32.xlu1 %v1451_v30, %s1591_s11 }
 0x224   : > { %1487 = vrot.lane.b32.xlu0 %v1471_v29, %s1595_s15 }
 0x226   : > { %1462 = vrot.lane.b32.xlu1 %v1451_v30, %s1593_s13 }
 0x228   : > { %1492 = vrot.lane.b32.xlu0 %v1471_v29, %s1596_s16 }
 0x22a   : > { %771 = vrot.lane.b32.xlu1 %v729_v24, %s1594_s14 }
 0x22c   : > { %1497 = vrot.lane.b32.xlu0 %v1471_v29, %s1597_s17 }
 0x22e   : > { %1467 = vrot.lane.b32.xlu1 %v1471_v29, %s1592_s12 }
 0x230   : > { %799 = vrot.lane.b32.xlu0 %v720_v22, %s1598_s18 }
 0x232   : > { %779 = vrot.lane.b32.xlu1 %v729_v24, %s1595_s15 }
 0x234   : > { %803 = vrot.lane.b32.xlu0 %v729_v24, %s1598_s18 }
 0x236   : > { %787 = vrot.lane.b32.xlu1 %v729_v24, %s1596_s16 }
 0x23a   : > { %795 = vrot.lane.b32.xlu1 %v729_v24, %s1597_s17 }
 0x23e   : > { %801 = vrot.lane.b32.xlu1 %v721_v27, %s1598_s18  ;;  %s305_s18 = scalar_lea.vmem %s1995_s8, %s1297_s29 }
 0x242   : > { %1502 = vrot.lane.b32.xlu1 %v1471_v29, %s1599_s19 }
 0x28a   : > { %v1473_v25 = vpop.permute.xlu0 %1472 }
 0x28b   : > { %v1474_v60 = vunpack.i.l.bf16 %v1473_v25  ;;  %v1475_v62 = vunpack.i.h.bf16 %v1473_v25 }
 0x28d   : > { %v754_v7 = vsel %vm343_vm3, %v1474_v60, %v1475_v62 }
 0x28e   : > { %v1862_v32 = vpop.permute.xlu0 %1477 }
 0x28f   : > { %v1479_v56 = vunpack.i.l.bf16 %v1862_v32  ;;  %v1480_v13 = vunpack.i.h.bf16 %v1862_v32 }
 0x290   : > { %v1453_v33 = vpop.permute.xlu1 %1452 }
 0x291   : > { %v1454_v34 = vunpack.i.l.bf16 %v1453_v33  ;;  %v1455_v50 = vunpack.i.h.bf16 %v1453_v33  ;;  %v765_v23 = vsel %vm355_vm2, %v1479_v56, %v1480_v13 }
 0x292   : > { %v1483_v35 = vpop.permute.xlu0 %1482 }
 0x293   : > { %v1506_v36 = vpack.i.bf16 %v1454_v34, %v729_v24  ;;  %v1484_v39 = vunpack.i.l.bf16 %v1483_v35  ;;  %v1485_v6 = vunpack.i.h.bf16 %v1483_v35 }
 0x294   : > { %v1458_v37 = vpop.permute.xlu1 %1457 }
 0x295   : > { %1507 = vrot.lane.b32.xlu0 %v1506_v36, %s1599_s19  ;;  %v1459_v42 = vunpack.i.l.bf16 %v1458_v37  ;;  %v1460_v55 = vunpack.i.h.bf16 %v1458_v37  ;;  %v773_v14 = vsel %vm365_vm6, %v1484_v39, %v1485_v6 }
 0x296   : > { %v1865_v38 = vpop.permute.xlu0 %1487 }
 0x297   : > { %v1489_v40 = vunpack.i.l.bf16 %v1865_v38  ;;  %v753_v0 = vsel %vm343_vm3, %v1460_v55, %v1474_v60  ;;  %v755_v5 = vsel %vm343_vm3, %v1475_v62, %v1459_v42  ;;  %v1490_v21 = vunpack.i.h.bf16 %v1865_v38  ;;  %v1078_v38 = vld [vmem:[%s1993_s6] sm:$0xff] }
 0x298   : > { %v1463_v41 = vpop.permute.xlu1 %1462  ;;  %v1551_v9 = vpack.i.bf16 %v755_v5, %v754_v7 }
 0x299   : > { %v1464_v43 = vunpack.i.l.bf16 %v1463_v41  ;;  %v1526_v44 = vpack.i.bf16 %v1489_v40, %v1484_v39  ;;  %v1465_v53 = vunpack.i.h.bf16 %v1463_v41  ;;  %v781_v25 = vsel %vm374_vm4, %v1489_v40, %v1490_v21 }
 0x29a   : > { %v1493_v45 = vpop.permute.xlu0 %1492 }
 0x29b   : > { %v1511_v26 = vpack.i.bf16 %v1464_v43, %v1459_v42  ;;  %1527 = vrot.lane.b32.xlu1 %v1526_v44, %s1599_s19  ;;  %v1494_v47 = vunpack.i.l.bf16 %v1493_v45  ;;  %v764_v61 = vsel %vm355_vm2, %v1465_v53, %v1479_v56  ;;  %v1495_v16 = vunpack.i.h.bf16 %v1493_v45  ;;  %v1087_v42 = vld [vmem:[%s1994_s7] sm:$0xff] }
 0x29c   : > { %v772_v31 = vpop.permute.xlu1 %771  ;;  %v1541_v1 = vpack.i.bf16 %v764_v61, %v753_v0  ;;  %v766_v20 = vsel %vm355_vm2, %v1480_v13, %v1464_v43 }
 0x29d   : > { %1512 = vrot.lane.b32.xlu0 %v1511_v26, %s1599_s19  ;;  %v774_v10 = vsel %vm365_vm6, %v1485_v6, %v772_v31  ;;  %v789_v22 = vsel %vm383_vm8, %v1494_v47, %v1495_v16  ;;  %v1556_v29 = vpack.i.bf16 %v766_v20, %v765_v23 }
 0x29e   : > { %v1872_v46 = vpop.permute.xlu0 %1497  ;;  %v1561_v17 = vpack.i.bf16 %v774_v10, %v773_v14 }
 0x29f   : > { %v1499_v48 = vunpack.i.l.bf16 %v1872_v46  ;;  %v1500_v32 = vunpack.i.h.bf16 %v1872_v46 }
 0x2a0   : > { %v1468_v49 = vpop.permute.xlu1 %1467 }
 0x2a1   : > { %v1469_v51 = vunpack.i.l.bf16 %v1468_v49  ;;  %v1531_v52 = vpack.i.bf16 %v1499_v48, %v1494_v47  ;;  %v1470_v3 = vunpack.i.h.bf16 %v1468_v49  ;;  %v797_v37 = vsel %vm392_vm5, %v1499_v48, %v1500_v32 }
 0x2a3   : > { %1532 = vrot.lane.b32.xlu1 %v1531_v52, %s1599_s19  ;;  %v742_v54 = vsel %vm331_vm1, %v1455_v50, %v1469_v51  ;;  %v743_v11 = vsel %vm331_vm1, %v1469_v51, %v1470_v3  ;;  %v744_v12 = vsel %vm331_vm1, %v1470_v3, %v1454_v34  ;;  %v800_v34 = vpop.permute.xlu0 %799  ;;  %vm1997_vm1 = vcmask 588800  }
 0x2a4   : > { %v780_v57 = vpop.permute.xlu1 %779  ;;  %v1536_v58 = vpack.i.bf16 %v742_v54, %v1676_v4  ;;  %v1546_v18 = vpack.i.bf16 %v744_v12, %v743_v11  ;;  %vm1998_vm2 = vmmov %vm1997_vm1 }
 0x2a5   : > { %v1516_v59 = vpack.i.bf16 %v780_v57, %v772_v31  ;;  %v782_v24 = vsel %vm374_vm4, %v1490_v21, %v780_v57 }
 0x2a6   : > { %v1566_v33 = vpack.i.bf16 %v782_v24, %v781_v25 }
 0x2a7   : > { %1517 = vrot.lane.b32.xlu0 %v1516_v59, %s1599_s19  ;;  %1537 = vrot.lane.b32.xlu1 %v1536_v58, %s1599_s19  ;;  %v804_v40 = vpop.permute.xlu0 %803 }
 0x2a8   : > { %v788_v63 = vpop.permute.xlu1 %787 }
 0x2a9   : > { %v790_v19 = vsel %vm383_vm8, %v1495_v16, %v788_v63 }
 0x2aa   : > { %v1571_v27 = vpack.i.bf16 %v790_v19, %v789_v22 }
 0x2ab   : > { %1542 = vrot.lane.b32.xlu1 %v1541_v1, %s1599_s19 }
 0x2ac   : > { %v796_v4 = vpop.permute.xlu1 %795 }
 0x2ad   : > { %v1521_v8 = vpack.i.bf16 %v796_v4, %v788_v63  ;;  %v798_v35 = vsel %vm392_vm5, %v1500_v32, %v796_v4 }
 0x2ae   : > { %v1576_v39 = vpack.i.bf16 %v798_v35, %v797_v37 }
 0x2af   : > { %1522 = vrot.lane.b32.xlu0 %v1521_v8, %s1599_s19  ;;  %1552 = vrot.lane.b32.xlu1 %v1551_v9, %s1599_s19 }
 0x2b0   : > { %v802_v30 = vpop.permute.xlu1 %801 }
 0x2b1   : > { %v805_v36 = vsel %vm401_vm7, %v800_v34, %v802_v30  ;;  %v806_v41 = vsel %vm401_vm7, %v802_v30, %v804_v40 }
 0x2b3   : > { %1547 = vrot.lane.b32.xlu0 %v1546_v18, %s1599_s19  ;;  %1562 = vrot.lane.b32.xlu1 %v1561_v17, %s1599_s19 }
 0x2b4   : > { %v1503_v43 = vpop.permute.xlu1 %1502 }
 0x2b5   : > { %v1505_v49 = vunpack.i.h.bf16 %v1503_v43  ;;  %v1504_v50 = vunpack.i.l.bf16 %v1503_v43 }
 0x2b7   : > { %1557 = vrot.lane.b32.xlu0 %v1556_v29, %s1599_s19  ;;  %1572 = vrot.lane.b32.xlu1 %v1571_v27, %s1599_s19  ;;  %v881_v58 = vsel %vm477_vm10, %v1504_v50, %v1505_v49 }
 0x2bb   : > { %1567 = vrot.lane.b32.xlu0 %v1566_v33, %s1599_s19  ;;  %874 = vrot.lane.b32.xlu1 %v805_v36, %s1599_s19 }
 0x2bf   : > { %1577 = vrot.lane.b32.xlu0 %v1576_v39, %s1599_s19  ;;  %872 = vrot.lane.b32.xlu1 %v800_v34, %s1599_s19 }
 0x2c3   : > { %876 = vrot.lane.b32.xlu0 %v806_v41, %s1599_s19  ;;  %1081 = vperm.xlu1 %1449, %v1078_v38  }
 0x2c7   : > { %878 = vrot.lane.b32.xlu0 %v804_v40, %s1599_s19 }
 0x2cb   : > { %1090 = vperm.xlu0 %1450, %v1087_v42  }
 0x307   : > { %v1508_v45 = vpop.permute.xlu0 %1507 }
 0x308   : > { %v1509_v51 = vunpack.i.l.bf16 %v1508_v45  ;;  %v1510_v55 = vunpack.i.h.bf16 %v1508_v45 }
 0x30a   : > { %v882_v56 = vsel %vm477_vm10, %v1505_v49, %v1509_v51 }
 0x30d   : > { %v1923_v44 = vpop.permute.xlu1 %1527 }
 0x30e   : > { %v1530_v59 = vunpack.i.h.bf16 %v1923_v44  ;;  %v1529_v25 = vunpack.i.l.bf16 %v1923_v44 }
 0x30f   : > { %v1513_v31 = vpop.permute.xlu0 %1512 }
 0x310   : > { %v1515_v0 = vunpack.i.h.bf16 %v1513_v31  ;;  %v1514_v1 = vunpack.i.l.bf16 %v1513_v31 }
 0x315   : > { %v1925_v26 = vpop.permute.xlu1 %1532 }
 0x316   : > { %v1534_v44 = vunpack.i.l.bf16 %v1925_v26 }
 0x319   : > { %v1538_v46 = vpop.permute.xlu1 %1537  ;;  %v1927_v47 = vpop.permute.xlu0 %1517 }
 0x31a   : > { %v1539_v54 = vunpack.i.l.bf16 %v1538_v46  ;;  %v1540_v60 = vunpack.i.h.bf16 %v1538_v46  ;;  %v1519_v23 = vunpack.i.l.bf16 %v1927_v47  ;;  %v1520_v36 = vunpack.i.h.bf16 %v1927_v47 }
 0x31c   : > { %v880_v6 = vsel %vm477_vm10, %v1539_v54, %v1504_v50 }
 0x31d   : > { %v1543_v48 = vpop.permute.xlu1 %1542 }
 0x31e   : > { %v1544_v11 = vunpack.i.l.bf16 %v1543_v48  ;;  %v1545_v14 = vunpack.i.h.bf16 %v1543_v48 }
 0x321   : > { %v1929_v52 = vpop.permute.xlu0 %1522  ;;  %v1553_v53 = vpop.permute.xlu1 %1552 }
 0x322   : > { %v1555_v3 = vunpack.i.h.bf16 %v1553_v53  ;;  %v1554_v5 = vunpack.i.l.bf16 %v1553_v53  ;;  %v1524_v47 = vunpack.i.l.bf16 %v1929_v52  ;;  %v1535_v53 = vunpack.i.h.bf16 %v1925_v26 }
 0x323   : > { %v1525_v54 = vunpack.i.h.bf16 %v1929_v52 }
 0x324   : > { %v888_v19 = vsel %vm477_vm10, %v1555_v3, %v1514_v1  ;;  %v886_v20 = vsel %vm477_vm10, %v1544_v11, %v1554_v5  ;;  %v887_v22 = vsel %vm477_vm10, %v1554_v5, %v1555_v3 }
 0x325   : > { %v1548_v57 = vpop.permute.xlu0 %1547  ;;  %v1563_v63 = vpop.permute.xlu1 %1562 }
 0x326   : > { %v1550_v61 = vunpack.i.h.bf16 %v1548_v57  ;;  %v1549_v62 = vunpack.i.l.bf16 %v1548_v57  ;;  %v1565_v18 = vunpack.i.h.bf16 %v1563_v63  ;;  %v1564_v21 = vunpack.i.l.bf16 %v1563_v63 }
 0x328   : > { %v885_v4 = vsel %vm477_vm10, %v1550_v61, %v1510_v55  ;;  %v883_v7 = vsel %vm477_vm10, %v1540_v60, %v1549_v62  ;;  %v884_v8 = vsel %vm477_vm10, %v1549_v62, %v1550_v61  ;;  %v894_v38 = vsel %vm477_vm10, %v1565_v18, %v1519_v23 }
 0x329   : > { %v1286_v9 = vpack.c.bf16 %v885_v4, %v882_v56  ;;  %v1271_v10 = vpack.c.bf16 %v883_v7, %v880_v6  ;;  %v1558_v12 = vpop.permute.xlu0 %1557  ;;  %v1269_v13 = vpack.c.bf16 %v884_v8, %v881_v58  ;;  %v1573_v30 = vpop.permute.xlu1 %1572  ;;  %v892_v40 = vsel %vm477_vm10, %v1529_v25, %v1564_v21 }
 0x32a   : > { %v1560_v16 = vunpack.i.h.bf16 %v1558_v12  ;;  %v1559_v17 = vunpack.i.l.bf16 %v1558_v12  ;;  %v1575_v41 = vunpack.i.h.bf16 %v1573_v30  ;;  %v1574_v42 = vunpack.i.l.bf16 %v1573_v30 }
 0x32b   : > { %1270 = vmatprep.subr.bf16.mxu0 %v1269_v13  ;;  %1287 = vmatpush3.bf16.msra.mxu1 %v1286_v9  ;;  %v893_v43 = vsel %vm477_vm10, %v1564_v21, %v1565_v18  ;;  %v1581_v21 = vld [vmem:[%s1665_s10] sm:$0xff] }
 0x32c   : > { %v891_v27 = vsel %vm477_vm10, %v1560_v16, %v1515_v0  ;;  %v889_v29 = vsel %vm477_vm10, %v1545_v14, %v1559_v17  ;;  %1272 = vmatpush1.bf16.msra.mxu0 %v1271_v10  ;;  %1288 = vmatprep.subr.bf16.mxu1 %v1600_v28  ;;  %v890_v24 = vsel %vm477_vm10, %v1559_v17, %v1560_v16 }
 0x32d   : > { %v1289_v32 = vpack.c.bf16 %v891_v27, %v888_v19  ;;  %v1275_v33 = vpack.c.bf16 %v889_v29, %v886_v20  ;;  %v1568_v34 = vpop.permute.xlu0 %1567  ;;  %v1273_v35 = vpack.c.bf16 %v890_v24, %v887_v22  ;;  %v875_v57 = vpop.permute.xlu1 %874  ;;  %v900_v58 = vsel %vm477_vm10, %v1575_v41, %v1524_v47  ;;  %v1582_v27 = vld [vmem:[%s1665_s10 + $0x8] sm:$0xff] }
 0x32e   : > { %v1570_v37 = vunpack.i.h.bf16 %v1568_v34  ;;  %v1569_v39 = vunpack.i.l.bf16 %v1568_v34  ;;  %v899_v60 = vsel %vm477_vm10, %v1574_v42, %v1575_v41 }
 0x32f   : > { %1274 = vmatprep.subr.bf16.mxu0 %v1273_v35  ;;  %1290 = vmatpush3.bf16.msra.mxu1 %v1289_v32 }
 0x330   : > { %v897_v45 = vsel %vm477_vm10, %v1570_v37, %v1520_v36  ;;  %v895_v31 = vsel %vm477_vm10, %v1530_v59, %v1569_v39  ;;  %1276 = vmatpush1.bf16.msra.mxu0 %v1275_v33  ;;  %1291 = vmatprep.subr.bf16.mxu1 %v1600_v28  ;;  %v896_v46 = vsel %vm477_vm10, %v1569_v39, %v1570_v37 }
 0x331   : > { %v1292_v48 = vpack.c.bf16 %v897_v45, %v894_v38  ;;  %v1279_v49 = vpack.c.bf16 %v895_v31, %v892_v40  ;;  %v1578_v50 = vpop.permute.xlu0 %1577  ;;  %v1277_v51 = vpack.c.bf16 %v896_v46, %v893_v43  ;;  %v898_v59 = vsel %vm477_vm10, %v1534_v44, %v1574_v42  ;;  %v873_v3 = vpop.permute.xlu1 %872 }
 0x332   : > { %v1580_v55 = vunpack.i.h.bf16 %v1578_v50  ;;  %v1579_v56 = vunpack.i.l.bf16 %v1578_v50  ;;  %v904_v7 = vsel %vm477_vm10, %v873_v3, %v875_v57 }
 0x333   : > { %1278 = vmatprep.subr.bf16.mxu0 %v1277_v51  ;;  %1293 = vmatpush3.bf16.msra.mxu1 %v1292_v48 }
 0x334   : > { %v903_v61 = vsel %vm477_vm10, %v1580_v55, %v1525_v54  ;;  %v901_v62 = vsel %vm477_vm10, %v1535_v53, %v1579_v56  ;;  %1280 = vmatpush1.bf16.msra.mxu0 %v1279_v49  ;;  %1294 = vmatprep.subr.bf16.mxu1 %v1600_v28  ;;  %v902_v26 = vsel %vm477_vm10, %v1579_v56, %v1580_v55  ;;  %v807_v28 = vld [vmem:[%s1992_s5] sm:$0xff] }
 0x335   : > { %v1295_v52 = vpack.c.bf16 %v903_v61, %v900_v58  ;;  %v1283_v63 = vpack.c.bf16 %v901_v62, %v898_v59  ;;  %v877_v0 = vpop.permute.xlu0 %876  ;;  %v1281_v1 = vpack.c.bf16 %v902_v26, %v899_v60 }
 0x336   : > { %v905_v5 = vsel %vm477_vm10, %v875_v57, %v877_v0 }
 0x337   : > { %1282 = vmatprep.subr.bf16.mxu0 %v1281_v1  ;;  %1296 = vmatpush3.bf16.msra.mxu1 %v1295_v52 }
 0x338   : > { %1284 = vmatpush1.bf16.msra.mxu0 %v1283_v63  ;;  %1236 = vmatprep.subr.mxu1 %v1601_v15 }
 0x339   : > { %v879_v6 = vpop.permute.xlu0 %878  ;;  %953 = vmatprep.subr.mxu0 %v905_v5 }
 0x33a   : > { %v906_v4 = vsel %vm477_vm10, %v877_v0, %v879_v6 }
 0x33b   : > { %1237 = vmatpush3.msra.mxu1 %v906_v4 }
 0x33c   : > { %954 = vmatpush1.msra.mxu0 %v904_v7  ;;  %1239 = vmatmul.mubr.msk.f32.vlgmr.msra.gmra.mrb[2].mxu1 %vm1997_vm1, %v807_v28 }
 0x33d   : > { %1175 = vmatmul.mubr.msk.f32.vlgmr.msra.gmra.mrb[2].mxu0 %vm1998_vm2, %v807_v28 }
 0x342   : > { %v1082_v8 = vpop.permute.xlu1 %1081 }
 0x34a   : > { %v1091_v12 = vpop.permute.xlu0 %1090 }
 0x40f   : > { %v1074_v15 = vpop.f32.mrb[2].mxu1 }
 0x410   : > { %v1086_v9 = vmul.f32 %v1082_v8, %v1074_v15  ;;  %v1003_v10 = vpop.f32.mrb[2].mxu0  ;;  %v1240_v11 = vpop.f32.mrb[3].mxu1 }
 0x411   : > { %v1084_v13 = vmul.f32 %v1082_v8, %v1003_v10  ;;  %v1005_v14 = vpop.f32.mrb[3].mxu0 }
 0x412   : > { %v1095_v16 = vadd.f32 %v1091_v12, %v1086_v9  ;;  %v1085_v17 = vmul.f32 %v1082_v8, %v1005_v14 }
 0x413   : > { %v1093_v18 = vadd.f32 %v1091_v12, %v1084_v13 }
 0x414   : > { %v1098_v19 = vadd.f32 %v1095_v16, %v1670_v2  ;;  %v1094_v20 = vadd.f32 %v1091_v12, %v1085_v17 }
 0x415   : > { %v1096_v22 = vadd.f32 %v1581_v21, %v1093_v18 }
 0x416   : > { %vm1101_vm3 = vcmp.gt.f32.partialorder %v1098_v19, 0.0  ;;  %v1104_v23 = vmul.f32 0.1, %v1098_v19  ;;  %v1097_v29 = vadd.f32 %v1582_v27, %v1094_v20 }
 0x417   : > { %vm1099_vm4 = vcmp.gt.f32.partialorder %v1096_v22, 0.0  ;;  %v1102_v24 = vmul.f32 0.1, %v1096_v22 }
 0x418   : > { %v1107_v30 = vsel %vm1101_vm3, %v1098_v19, %v1104_v23  ;;  %vm1100_vm5 = vcmp.gt.f32.partialorder %v1097_v29, 0.0  ;;  %v1103_v25 = vmul.f32 0.1, %v1097_v29 }
 0x419   : > { %1110 = vst.msk [vmem:[%s305_s18 + $0x10] sm:$0xff] %vm313_vm0, %v1107_v30  ;;  %v1105_v2 = vsel %vm1099_vm4, %v1096_v22, %v1102_v24 }
 0x41a   : > { %1108 = vst [vmem:[%s305_s18] sm:$0xff] %v1105_v2  ;;  %v1106_v32 = vsel %vm1100_vm5, %v1097_v29, %v1103_v25 }
 0x41b   : > { %1109 = vst [vmem:[%s305_s18 + $0x8] sm:$0xff] %v1106_v32 }
 0x41c PF: > { %s18_s27 = sadd.s32 1, %s1589_s27  }
 0x41d   : > { %p15_p4 = scmp.ge.s32.totalorder %s18_s27, 4  }
 0x41f   :  { %17 = sbr.rel (!%p15_p4) target bundleno = 1 (0x1), region = 82 }

</bundles_post_ra>
